<compile_context>
chip_gen: v5e
topology: v5e:2x2
jax: 0.10.0
libtpu: 0.0.40
codegen_flags: <defaults>
</compile_context>

<pallas_src>
import jax
import jax.numpy as jnp
from jax.experimental import pallas as pl
from jax.experimental.pallas import tpu as pltpu

ALPHA = 1.0
GAMMA = 2  # implemented as an explicit square below


def _round_up(x, m):
    return ((x + m - 1) // m) * m


def _make_focal_kernel(n_valid, tn):
    def kernel(logits_ref, targets_ref, out_ref):
        i = pl.program_id(0)

        x = logits_ref[...].astype(jnp.float32)            # (TN, C)
        t = targets_ref[...]                               # (TN, 1) int32

        # --- single exp pass, reused for denom and target prob -------------
        m = jnp.max(x, axis=-1, keepdims=True)             # (TN, 1)
        e = jnp.exp(x - m)                                 # (TN, C)
        denom = jnp.sum(e, axis=-1, keepdims=True)         # (TN, 1)

        col = jax.lax.broadcasted_iota(jnp.int32, x.shape, 1)
        onehot = col == t                                  # (TN, C)
        tgt_logit = jnp.sum(jnp.where(onehot, x, 0.0), axis=-1, keepdims=True)
        num = jnp.sum(jnp.where(onehot, e, 0.0), axis=-1, keepdims=True)

        # per-row cross entropy (numerically stable) and p_t without a 2nd exp
        ce = jnp.log(denom) + m - tgt_logit                # (TN, 1)
        pt = jnp.minimum(num * pl.reciprocal(denom, approx=True), 1.0)

        # focal weighting, gamma=2 as an explicit square (VALU, not pow/EUP)
        w = 1.0 - pt
        f = (ALPHA * w * w) * ce                           # (TN, 1)

        # mask padded rows of the ragged last tile
        row = i * tn + jax.lax.broadcasted_iota(jnp.int32, (tn, 1), 0)
        f = jnp.where(row < n_valid, f, 0.0)

        # lane-dense per-block partial sum (unmasked vst); wrapper reads [.., 0, 0]
        out_ref[...] = jnp.broadcast_to(jnp.sum(f), out_ref.shape)

    return kernel


def focal_loss(logits, targets, *, tile_rows=None):
    """logits: (N, C) float (any dtype), targets: (N,) int class ids -> scalar f32."""
    n, c = logits.shape
    itemsize = jnp.dtype(logits.dtype).itemsize

    if tile_rows is None:
        # ~2 MiB per input tile buffer: big enough to amortize per-step overhead,
        # small enough (w/ ~3-4x f32 intermediates + double buffering) for v7x's
        # 64 MiB VMEM as well as v5e/v6e.
        tile_rows = (2 * 1024 * 1024) // max(1, c * itemsize)
        tile_rows = max(16, min(1024, tile_rows))
        tile_rows = (tile_rows // 16) * 16                 # bf16-friendly sublane pack

    tn = min(tile_rows, _round_up(n, 16))
    n_pad = _round_up(n, tn)
    num_blocks = n_pad // tn

    targets2d = targets.astype(jnp.int32).reshape(n, 1)
    if n_pad != n:
        logits = jnp.pad(logits, ((0, n_pad - n), (0, 0)))
        targets2d = jnp.pad(targets2d, ((0, n_pad - n), (0, 0)))

    # TODO(synk): for very large C, additionally tile the class dim with an
    # online (flash-style) max/sum-exp and offset the class iota per tile.
    partials = pl.pallas_call(
        _make_focal_kernel(n, tn),
        out_shape=jax.ShapeDtypeStruct((num_blocks, 8, 128), jnp.float32),
        grid=(num_blocks,),
        in_specs=[
            pl.BlockSpec((tn, c), lambda i: (i, 0)),
            pl.BlockSpec((tn, 1), lambda i: (i, 0)),
        ],
        out_specs=pl.BlockSpec((1, 8, 128), lambda i: (i, 0, 0)),
        compiler_params=pltpu.CompilerParams(
            dimension_semantics=("parallel",),
            vmem_limit_bytes=48 * 1024 * 1024,
        ),
    )(logits, targets2d)

    # reduce=True -> mean over the true N rows
    return jnp.sum(partials[:, 0, 0]) / jnp.float32(n)


def _focal_loss_ref(logits, targets):
    # pure-JAX reference matching the PyTorch module (alpha=1, gamma=2, reduce=True)
    logz = jax.nn.log_softmax(logits.astype(jnp.float32), axis=-1)
    ce = -jnp.take_along_axis(logz, targets[:, None].astype(jnp.int32), axis=-1)[:, 0]
    pt = jnp.exp(-ce)
    return jnp.mean(ALPHA * (1.0 - pt) ** GAMMA * ce)


if __name__ == "__main__":
    key = jax.random.PRNGKey(0)
    k1, k2 = jax.random.split(key)
    N, C = 8, 32
    logits = jax.random.normal(k1, (N, C), dtype=jnp.float32)
    targets = jax.random.randint(k2, (N,), 0, C, dtype=jnp.int32)

    out = focal_loss(logits, targets)
    out = jax.block_until_ready(out)

    ref = _focal_loss_ref(logits, targets)
    assert jnp.allclose(out, ref, atol=1e-3, rtol=1e-3), (out, ref)
    print("KERNEL_OK")
</pallas_src>

<mosaic_0001>
module attributes {stable_mosaic.version = 11 : i64} {
  func.func @kernel(%arg0: i32, %arg1: memref<16x32xf32, #tpu.memory_space<vmem>>, %arg2: memref<16x1xi32, #tpu.memory_space<vmem>>, %arg3: memref<1x8x128xf32, #tpu.memory_space<vmem>>) attributes {dimension_semantics = [#tpu.dimension_semantics<parallel>], iteration_bounds = array<i64: 1>, scalar_prefetch = 0 : i64, scratch_operands = 0 : i64, tpu.core_type = #tpu.core_type<tc>, window_params = [{transform_indices = @transform_0, window_bounds = array<i64: 16, 32>}, {transform_indices = @transform_1, window_bounds = array<i64: 16, 1>}, {transform_indices = @transform_2, window_bounds = array<i64: 1, 8, 128>}]} {
    %c0 = arith.constant 0 : index
    %c0_0 = arith.constant 0 : index
    %0 = vector.load %arg1[%c0, %c0_0] : memref<16x32xf32, #tpu.memory_space<vmem>>, vector<16x32xf32>
    %c0_1 = arith.constant 0 : index
    %c0_2 = arith.constant 0 : index
    %1 = vector.load %arg2[%c0_1, %c0_2] : memref<16x1xi32, #tpu.memory_space<vmem>>, vector<16x1xi32>
    %cst = arith.constant dense<0xFF800000> : vector<16xf32>
    %2 = vector.multi_reduction <maximumf>, %0, %cst [1] : vector<16x32xf32> to vector<16xf32>
    %3 = vector.shape_cast %2 : vector<16xf32> to vector<16x1xf32>
    %4 = vector.broadcast %3 : vector<16x1xf32> to vector<16x32xf32>
    %5 = arith.subf %0, %4 : vector<16x32xf32>
    %6 = math.exp %5 : vector<16x32xf32>
    %cst_3 = arith.constant dense<0.000000e+00> : vector<16xf32>
    %7 = vector.multi_reduction <add>, %6, %cst_3 [1] : vector<16x32xf32> to vector<16xf32>
    %8 = vector.shape_cast %7 : vector<16xf32> to vector<16x1xf32>
    %9 = tpu.iota {dimensions = array<i32: 1>} : vector<16x32xi32>
    %10 = vector.broadcast %1 : vector<16x1xi32> to vector<16x32xi32>
    %11 = arith.cmpi eq, %9, %10 : vector<16x32xi32>
    %cst_4 = arith.constant 0.000000e+00 : f32
    %12 = vector.broadcast %cst_4 : f32 to vector<16x32xf32>
    %13 = arith.select %11, %0, %12 : vector<16x32xi1>, vector<16x32xf32>
    %cst_5 = arith.constant dense<0.000000e+00> : vector<16xf32>
    %14 = vector.multi_reduction <add>, %13, %cst_5 [1] : vector<16x32xf32> to vector<16xf32>
    %15 = vector.shape_cast %14 : vector<16xf32> to vector<16x1xf32>
    %cst_6 = arith.constant 0.000000e+00 : f32
    %16 = vector.broadcast %cst_6 : f32 to vector<16x32xf32>
    %17 = arith.select %11, %6, %16 : vector<16x32xi1>, vector<16x32xf32>
    %cst_7 = arith.constant dense<0.000000e+00> : vector<16xf32>
    %18 = vector.multi_reduction <add>, %17, %cst_7 [1] : vector<16x32xf32> to vector<16xf32>
    %19 = vector.shape_cast %18 : vector<16xf32> to vector<16x1xf32>
    %20 = math.log %8 : vector<16x1xf32>
    %21 = arith.addf %20, %3 : vector<16x1xf32>
    %22 = arith.subf %21, %15 : vector<16x1xf32>
    %23 = tpu.reciprocal %8 {approx = true} : vector<16x1xf32> -> vector<16x1xf32>
    %24 = arith.mulf %19, %23 : vector<16x1xf32>
    %cst_8 = arith.constant 1.000000e+00 : f32
    %25 = vector.broadcast %cst_8 : f32 to vector<16x1xf32>
    %26 = arith.minimumf %24, %25 : vector<16x1xf32>
    %cst_9 = arith.constant 1.000000e+00 : f32
    %27 = vector.broadcast %cst_9 : f32 to vector<16x1xf32>
    %28 = arith.subf %27, %26 : vector<16x1xf32>
    %cst_10 = arith.constant 1.000000e+00 : f32
    %29 = vector.broadcast %cst_10 : f32 to vector<16x1xf32>
    %30 = arith.mulf %29, %28 : vector<16x1xf32>
    %31 = arith.mulf %30, %28 : vector<16x1xf32>
    %32 = arith.mulf %31, %22 : vector<16x1xf32>
    %c16_i32 = arith.constant 16 : i32
    %33 = arith.muli %arg0, %c16_i32 : i32
    %34 = tpu.iota {dimensions = array<i32: 0>} : vector<16x1xi32>
    %35 = vector.broadcast %33 : i32 to vector<16x1xi32>
    %36 = arith.addi %35, %34 : vector<16x1xi32>
    %c8_i32 = arith.constant 8 : i32
    %37 = vector.broadcast %c8_i32 : i32 to vector<16x1xi32>
    %38 = arith.cmpi slt, %36, %37 : vector<16x1xi32>
    %cst_11 = arith.constant 0.000000e+00 : f32
    %39 = vector.broadcast %cst_11 : f32 to vector<16x1xf32>
    %40 = arith.select %38, %32, %39 : vector<16x1xi1>, vector<16x1xf32>
    %41 = vector.shape_cast %40 : vector<16x1xf32> to vector<1x16x1xf32>
    %cst_12 = arith.constant dense<0.000000e+00> : vector<1xf32>
    %42 = vector.multi_reduction <add>, %41, %cst_12 [1, 2] : vector<1x16x1xf32> to vector<1xf32>
    %43 = vector.shape_cast %42 : vector<1xf32> to vector<1x1x1xf32>
    %44 = vector.extract %43[0, 0, 0] : f32 from vector<1x1x1xf32>
    %45 = vector.broadcast %44 : f32 to vector<1x8x128xf32>
    %c0_13 = arith.constant 0 : index
    %c0_14 = arith.constant 0 : index
    %c0_15 = arith.constant 0 : index
    %46 = vector.load %arg3[%c0_13, %c0_14, %c0_15] : memref<1x8x128xf32, #tpu.memory_space<vmem>>, vector<1x8x128xf32>
    tpu.vector_store %arg3[%c0_13, %c0_14, %c0_15], %45 {strides = array<i32>} : memref<1x8x128xf32, #tpu.memory_space<vmem>>, vector<1x8x128xf32>,
    return
  }
  func.func @transform_0(%arg0: i32) -> (i32, i32) {
    %c0_i32 = arith.constant 0 : i32
    %c0_i32_0 = arith.constant 0 : i32
    return %arg0, %c0_i32 : i32, i32
  }
  func.func @transform_1(%arg0: i32) -> (i32, i32) {
    %c0_i32 = arith.constant 0 : i32
    %c0_i32_0 = arith.constant 0 : i32
    return %arg0, %c0_i32 : i32, i32
  }
  func.func @transform_2(%arg0: i32) -> (i32, i32, i32) {
    %c0_i32 = arith.constant 0 : i32
    %c0_i32_0 = arith.constant 0 : i32
    %c0_i32_1 = arith.constant 0 : i32
    return %arg0, %c0_i32, %c0_i32_0 : i32, i32, i32
  }
}

</mosaic_0001>

<bundles_post_ra>
// kernel: tpu_custom_call.1
= control target key start
LH: loop header
LB: loop body
LE: loop exit
PB: predicated region body
PF: predicated region fallthrough
CT: control target
= control target key end

     0   :  { %vm16_vm0 = vcmask 261120   ;;  %s190_s0 = inlined_call_operand.vmem [shape: f32[16,32], index: 0, kind: input, shape index: {}]   ;;  %s191_s1 = inlined_call_operand.vmem [shape: s32[16,1], index: 1, kind: input, shape index: {}]   ;;  %s192_s2 = inlined_call_operand.hbm [shape: f32[1,8,128], index: 2, kind: output, shape index: {}]  }
   0x1   :  { %v12_v0 = vld [vmem:[%s190_s0] sm:$0xff] }
   0x2   :  { %7 = vsyncpa [#allocation3], 0  ;;  %v17_v1 = vsel %vm16_vm0, %v12_v0, -inf  ;;  %v160_v2 = vmov 0   ;;  %v14_v3 = vld [vmem:[%s191_s1] sm:$0xff]  ;;  %v35_v9 = vlaneseq  ;;  %vm92_vm2 = vcmask 7168  }
   0x3   :  { %127 = vset.pattern.permute.xlu0 %v160_v2  ;;  %s161_s0 = smov [#allocation2]   ;;  %s114_s15 = sshll.u32 %s192_s2, 4  ;;  %s115_s15 = int_to_ptr.hbm [resolvable:$true] %s114_s15 }
   0x4   :  { %18 = vmax.xlane.f32.xlu0 %v17_v1  ;;  %v36_v10 = vand.u32 127, %v35_v9  ;;  %s112_s1 = sshll.u32 %s161_s0, 4  ;;  %s113_s1 = int_to_ptr.vmem [resolvable:$true] %s112_s1 }
  0x18   :  { %38 = vperm.xlu0 %127, %v14_v3  }
  0x77   :  { %v19_v4 = vpop.xlane.xlu0 %18 }
  0x78   :  { %v23_v5 = vsub.f32 %v12_v0, %v19_v4 }
  0x7a   :  { %v25_v6 = vmul.f32 1.442695, %v23_v5 }
  0x7c   :  { %128 = vpow2.f32 %v25_v6 }
  0x82   :  { %v129_v7 = vpop.eup %128 }
  0x83   :  { %v29_v8 = vsel %vm16_vm0, %v129_v7, 0.0 }
  0x84   :  { %30 = vadd.xlane.f32.xlu1 %v29_v8 }
  0x8a   :  { %v39_v11 = vpop.permute.xlu0 %38 }
  0x8b   :  { %vm43_vm1 = vcmp.eq.s32.totalorder %v36_v10, %v39_v11 }
  0x8c   :  { %v53_v12 = vsel %vm43_vm1, %v129_v7, 0.0  ;;  %v45_v13 = vsel %vm43_vm1, %v12_v0, 0.0 }
  0x8d   :  { %v55_v14 = vsel %vm16_vm0, %v53_v12, 0.0  ;;  %v47_v15 = vsel %vm16_vm0, %v45_v13, 0.0 }
  0x8e   :  { %56 = vadd.xlane.f32.xlu1 %v55_v14  ;;  %48 = vadd.xlane.f32.xlu2 %v47_v15 }
  0xf7   :  { %v31_v16 = vpop.xlane.xlu1 %30 }
  0xf8   :  { %130 = vlog2.f32 %v31_v16 }
  0xf9   :  { %132 = vrcp.f32 %v31_v16 }
  0xfe   :  { %v131_v17 = vpop.eup %130 }
  0xff   :  { %v62_v18 = vmul.f32 0.6931472, %v131_v17  ;;  %v133_v19 = vpop.eup %132 }
 0x101   :  { %v57_v20 = vpop.xlane.xlu1 %56  ;;  %v65_v23 = vadd.f32 %v62_v18, %v19_v4  ;;  %v49_v24 = vpop.xlane.xlu2 %48 }
 0x102   :  { %v71_v21 = vmul.f32 %v133_v19, %v57_v20 }
 0x103   :  { %v67_v27 = vsub.f32 %v65_v23, %v49_v24 }
 0x104   :  { %v73_v22 = vmin.f32 %v71_v21, 1.0 }
 0x106   :  { %v75_v25 = vsub.f32 1.0, %v73_v22 }
 0x108   :  { %v77_v26 = vmul.f32 %v75_v25, %v75_v25 }
 0x10a   :  { %v79_v28 = vmul.f32 %v77_v26, %v67_v27 }
 0x10c   :  { %v93_v29 = vsel %vm92_vm2, %v79_v28, 0.0 }
 0x10d   :  { %96 = vadd.xlane.f32.xlu2 %v93_v29 }
 0x180   :  { %v97_v30 = vpop.xlane.xlu2 %96 }
 0x181   :  { %v98_v31 = vrot.slane %v97_v30, 4 }
 0x183   :  { %v99_v32 = vadd.f32 %v98_v31, %v97_v30 }
 0x185   :  { %v100_v33 = vrot.slane %v99_v32, 2 }
 0x187   :  { %v101_v34 = vadd.f32 %v100_v33, %v99_v32 }
 0x189   :  { %v102_v35 = vrot.slane %v101_v34, 1 }
 0x18b   :  { %v103_v36 = vadd.f32 %v102_v35, %v101_v34 }
 0x18d   :  { %123 = vpush %v103_v36 }
 0x1be   :  { %s124_s16 = spop %123 }
 0x1bf   :  { %v105_v37 = vstv %s124_s16 }
 0x1c0   :  { %106 = vst [vmem:[#allocation2] sm:$0xff] %v105_v37 }
 0x1c1   :  { %117 = dma.vmem_to_hbm [thread:$0]  %s113_s1, 128, %s115_s15, [#allocation3]  }
 0x1c2   :  { %158 = dma.done.wait [#allocation3], 128  }
 0x1c3   :  { %159 = vsyncadd [#allocation3], 4294967168 }
 0x1c4   :  { %122 = vsyncpa [#allocation3], 1 }

</bundles_post_ra>
